<compile_context>
chip_gen: v5e
topology: v5e:2x2
jax: 0.10.0
libtpu: 0.0.40
codegen_flags: <defaults>
</compile_context>

<pallas_src>
import functools

import jax
import jax.numpy as jnp
from jax.experimental import pallas as pl
from jax.experimental.pallas import tpu as pltpu


def _round_up(x, m):
    return (x + m - 1) // m * m


def _pick_tile(dim, target=512, granule=128):
    # Multiple of 128 so the tile is valid as both a sublane and a lane dim.
    return min(target, _round_up(dim, granule))


# ----------------------------------------------------------------------------
# Kernel 1: one GCN half-layer:  h = tanh(A @ B);  sum_out = sum_in + h
#   A: (M, K) bf16 graph tile, B: (K, D) bf16 embeddings, sums in f32.
# Grid = (M // tile_m, K // tile_k); axis 0 parallel, axis 1 = reduction.
# ----------------------------------------------------------------------------
def _gcn_layer_kernel(a_ref, b_ref, s_ref, h_ref, s_out_ref, acc_ref):
    k = pl.program_id(1)

    @pl.when(k == 0)
    def _():
        acc_ref[...] = jnp.zeros_like(acc_ref)

    acc_ref[...] += jnp.dot(a_ref[...], b_ref[...],
                            preferred_element_type=jnp.float32)

    @pl.when(k == pl.num_programs(1) - 1)
    def _():
        h = jnp.tanh(acc_ref[...])
        h_ref[...] = h.astype(h_ref.dtype)          # bf16 feed for next layer
        s_out_ref[...] = s_ref[...] + h             # f32 layer-sum accumulator


def _gcn_layer(a, b, s, tile_m, tile_k):
    M, K = a.shape
    D = b.shape[1]
    grid = (M // tile_m, K // tile_k)
    return pl.pallas_call(
        _gcn_layer_kernel,
        out_shape=(jax.ShapeDtypeStruct((M, D), jnp.bfloat16),
                   jax.ShapeDtypeStruct((M, D), jnp.float32)),
        grid_spec=pltpu.PrefetchScalarGridSpec(
            num_scalar_prefetch=0,
            grid=grid,
            in_specs=[pl.BlockSpec((tile_m, tile_k), lambda i, k: (i, k)),
                      pl.BlockSpec((tile_k, D), lambda i, k: (k, 0)),
                      pl.BlockSpec((tile_m, D), lambda i, k: (i, 0))],
            out_specs=(pl.BlockSpec((tile_m, D), lambda i, k: (i, 0)),
                       pl.BlockSpec((tile_m, D), lambda i, k: (i, 0))),
            scratch_shapes=[pltpu.VMEM((tile_m, D), jnp.float32)]),
        compiler_params=pltpu.CompilerParams(
            dimension_semantics=("parallel", "arbitrary"),
            vmem_limit_bytes=48 * 1024 * 1024),
    )(a, b, s)


def alternating_aggregate(R, E0, num_layers):
    """L layers of tanh(R @ item) / tanh(R^T @ user), summed over layers.

    Returns (user_sum, item_sum) with valid rows and the embedding dim kept
    zero-padded to a multiple of 128 (pad columns are exactly zero).
    """
    U, I = R.shape
    D = E0.shape[1]
    D_pad = _round_up(D, 128)
    tile_u = _pick_tile(U)
    tile_i = _pick_tile(I)
    U_pad = _round_up(U, tile_u)
    I_pad = _round_up(I, tile_i)

    # bf16 operands feed the MXU at native rate; zero padding stays exact
    # through every layer because tanh(0) == 0.
    Rp = jnp.zeros((U_pad, I_pad), jnp.bfloat16).at[:U, :I].set(
        R.astype(jnp.bfloat16))
    Rtp = Rp.T                       # hoisted: one transpose total, not L.
    item = jnp.zeros((I_pad, D_pad), jnp.bfloat16).at[:I, :D].set(
        E0.astype(jnp.bfloat16))
    u_sum = jnp.zeros((U_pad, D_pad), jnp.float32)
    i_sum = jnp.zeros((I_pad, D_pad), jnp.float32)

    # GCN_layer is a small static config value -> static Python loop of
    # tiled pallas_calls (R / R^T streamed from HBM every layer).
    for _ in range(num_layers):
        user, u_sum = _gcn_layer(Rp, item, u_sum, tile_u, tile_i)
        item, i_sum = _gcn_layer(Rtp, user, i_sum, tile_i, tile_u)

    return u_sum[:U], i_sum[:I]


# ----------------------------------------------------------------------------
# Kernel 2: BPR + L2 reg + three InfoNCE losses on gathered batch embeddings.
# All inputs are (B, D_pad) f32 (pad columns zero -> losses unaffected).
# Output: single SMEM (3,) vector [bpr, reg, ssl].
# ----------------------------------------------------------------------------
def _loss_kernel(u_ref, p_ref, n_ref, ep_ref, en_ref, out_ref, *,
                 reg_lambda, ssl_lambda, temperature, batch):
    u = u_ref[...]
    p = p_ref[...]
    n = n_ref[...]
    ep = ep_ref[...]
    en = en_ref[...]
    inv_b = 1.0 / float(batch)
    inv_t = 1.0 / float(temperature)

    # --- BPR loss: mean(softplus(neg_score - pos_score)) ---------------------
    pos_s = jnp.sum(u * p, axis=-1, keepdims=True)
    neg_s = jnp.sum(u * n, axis=-1, keepdims=True)
    x = neg_s - pos_s
    softplus = jnp.maximum(x, 0.0) + jnp.log1p(jnp.exp(-jnp.abs(x)))
    bpr = jnp.sum(softplus) * inv_b

    # --- L2 regularization on ego (layer-0) item embeddings ------------------
    reg = reg_lambda * 0.5 * (jnp.sum(ep * ep) + jnp.sum(en * en)) * inv_b

    # --- InfoNCE / SSL: normalize once, reuse; bf16 logits matmul; stable ----
    def _normalize(v):
        return v * jax.lax.rsqrt(jnp.sum(v * v, axis=-1, keepdims=True) + 1e-12)

    nu = _normalize(u)
    npos = _normalize(p)
    nu_b = nu.astype(jnp.bfloat16)
    np_b = npos.astype(jnp.bfloat16)

    def _infonce(na, nb, na_b, nb_b):
        pos = jnp.sum(na * nb, axis=-1, keepdims=True) * inv_t        # (B,1)
        logits = jnp.einsum('bd,cd->bc', na_b, nb_b,
                            preferred_element_type=jnp.float32) * inv_t
        m = jnp.max(logits, axis=-1, keepdims=True)                   # (B,1)
        ttl = jnp.sum(jnp.exp(logits - m), axis=-1, keepdims=True)    # (B,1)
        # -mean log(exp(pos)/ttl) == mean(log(ttl) + m - pos)
        return jnp.sum(jnp.log(ttl) + m - pos) * inv_b

    ssl = ssl_lambda * (_infonce(nu, nu, nu_b, nu_b)
                        + _infonce(npos, npos, np_b, np_b)
                        + _infonce(nu, npos, nu_b, np_b))

    out_ref[0] = bpr
    out_ref[1] = reg
    out_ref[2] = ssl


def egcf_losses(u_emb, p_emb, n_emb, ego_p, ego_n,
                reg_lambda, ssl_lambda, temperature):
    batch = u_emb.shape[0]
    kern = functools.partial(_loss_kernel,
                             reg_lambda=float(reg_lambda),
                             ssl_lambda=float(ssl_lambda),
                             temperature=float(temperature),
                             batch=batch)
    vmem = pl.BlockSpec(memory_space=pltpu.MemorySpace.VMEM)
    # TODO(synk): at production batch sizes (B >= 2048) tile this kernel over B
    # and stream the "nb" side instead of whole-array VMEM blocks.
    out = pl.pallas_call(
        kern,
        out_shape=jax.ShapeDtypeStruct((3,), jnp.float32),
        in_specs=[vmem] * 5,
        out_specs=pl.BlockSpec(memory_space=pltpu.MemorySpace.SMEM),
    )(u_emb, p_emb, n_emb, ego_p, ego_n)
    return out[0], out[1], out[2]


# ----------------------------------------------------------------------------
# EGCF forward (alternating mode)
# ----------------------------------------------------------------------------
def egcf_forward(R, item_embedding, user, positive, negative, *,
                 num_layers, reg_lambda, ssl_lambda, temperature):
    user_final, item_final = alternating_aggregate(R, item_embedding, num_layers)
    D = item_embedding.shape[1]
    D_pad = user_final.shape[1]
    # Gathers (embedding lookups) stay in plain JAX glue.
    # TODO(synk): fuse the gathers into the loss kernel via
    # PrefetchScalarGridSpec (ids as scalar-prefetch driving row index_maps) to
    # avoid the extra HBM round trip at scale.
    u_emb = user_final[user]
    p_emb = item_final[positive]
    n_emb = item_final[negative]
    ego_pad = jnp.zeros((item_embedding.shape[0], D_pad), jnp.float32
                        ).at[:, :D].set(item_embedding)
    ego_p = ego_pad[positive]
    ego_n = ego_pad[negative]
    bpr, reg, ssl = egcf_losses(u_emb, p_emb, n_emb, ego_p, ego_n,
                                reg_lambda, ssl_lambda, temperature)
    return [bpr, reg, ssl]


if __name__ == "__main__":
    # Small synthetic configuration (mirrors the module's config dict).
    num_users, num_items, emb_dim = 64, 128, 64
    gcn_layers = 3
    batch = 16
    reg_lambda, ssl_lambda, temperature = 1e-4, 0.1, 0.2

    key = jax.random.PRNGKey(0)
    k_emb, k_graph, k_u, k_p, k_n = jax.random.split(key, 5)

    # Xavier-uniform item embedding table (same init as nn.init.xavier_uniform_).
    bound = (6.0 / (num_items + emb_dim)) ** 0.5
    item_embedding = jax.random.uniform(
        k_emb, (num_items, emb_dim), jnp.float32, minval=-bound, maxval=bound)

    # Synthetic user-item interaction graph R, degree-normalized (dense stand-in
    # for the sparse adjacency built by data_graph.sparse_adjacency_matrix_R).
    inter = (jax.random.uniform(k_graph, (num_users, num_items)) < 0.08
             ).astype(jnp.float32)
    deg_u = jnp.maximum(inter.sum(axis=1, keepdims=True), 1.0)
    deg_i = jnp.maximum(inter.sum(axis=0, keepdims=True), 1.0)
    R = inter * jax.lax.rsqrt(deg_u) * jax.lax.rsqrt(deg_i)

    user = jax.random.randint(k_u, (batch,), 0, num_users)
    positive = jax.random.randint(k_p, (batch,), 0, num_items)
    negative = jax.random.randint(k_n, (batch,), 0, num_items)

    losses = egcf_forward(
        R, item_embedding, user, positive, negative,
        num_layers=gcn_layers, reg_lambda=reg_lambda,
        ssl_lambda=ssl_lambda, temperature=temperature)
    losses = jax.block_until_ready(losses)
    print("KERNEL_OK")
</pallas_src>

<mosaic_0001>
module attributes {stable_mosaic.version = 11 : i64} {
  func.func @_gcn_layer_kernel(%arg0: i32, %arg1: i32, %arg2: memref<128x128xbf16, #tpu.memory_space<vmem>>, %arg3: memref<128x128xbf16, #tpu.memory_space<vmem>>, %arg4: memref<128x128xf32, #tpu.memory_space<vmem>>, %arg5: memref<128x128xbf16, #tpu.memory_space<vmem>>, %arg6: memref<128x128xf32, #tpu.memory_space<vmem>>, %arg7: memref<128x128xf32, #tpu.memory_space<vmem>>) attributes {dimension_semantics = [#tpu.dimension_semantics<parallel>, #tpu.dimension_semantics<arbitrary>], iteration_bounds = array<i64: 1, 1>, scalar_prefetch = 0 : i64, scratch_operands = 1 : i64, tpu.core_type = #tpu.core_type<tc>, window_params = [{transform_indices = @transform_0, window_bounds = array<i64: 128, 128>}, {transform_indices = @transform_1, window_bounds = array<i64: 128, 128>}, {transform_indices = @transform_2, window_bounds = array<i64: 128, 128>}, {transform_indices = @transform_3, window_bounds = array<i64: 128, 128>}, {transform_indices = @transform_4, window_bounds = array<i64: 128, 128>}]} {
    %c0_i32 = arith.constant 0 : i32
    %0 = arith.cmpi eq, %arg1, %c0_i32 : i32
    %1 = arith.extui %0 : i1 to i32
    %c0_i32_0 = arith.constant 0 : i32
    %2 = arith.cmpi ne, %1, %c0_i32_0 : i32
    scf.if %2 {
      %cst_10 = arith.constant 0.000000e+00 : f32
      %12 = vector.broadcast %cst_10 : f32 to vector<128x128xf32>
      %c0_11 = arith.constant 0 : index
      %c0_12 = arith.constant 0 : index
      %13 = vector.load %arg7[%c0_11, %c0_12] : memref<128x128xf32, #tpu.memory_space<vmem>>, vector<128x128xf32>
      tpu.vector_store %arg7[%c0_11, %c0_12], %12 {strides = array<i32>} : memref<128x128xf32, #tpu.memory_space<vmem>>, vector<128x128xf32>,
    } else {
    }
    %c0 = arith.constant 0 : index
    %c0_1 = arith.constant 0 : index
    %3 = vector.load %arg7[%c0, %c0_1] : memref<128x128xf32, #tpu.memory_space<vmem>>, vector<128x128xf32>
    %c0_2 = arith.constant 0 : index
    %c0_3 = arith.constant 0 : index
    %4 = vector.load %arg2[%c0_2, %c0_3] : memref<128x128xbf16, #tpu.memory_space<vmem>>, vector<128x128xbf16>
    %c0_4 = arith.constant 0 : index
    %c0_5 = arith.constant 0 : index
    %5 = vector.load %arg3[%c0_4, %c0_5] : memref<128x128xbf16, #tpu.memory_space<vmem>>, vector<128x128xbf16>
    %cst = arith.constant dense<0.000000e+00> : vector<128x128xf32>
    %6 = tpu.matmul %4, %5, %cst {dimension_numbers = #tpu.dot_dimension_numbers<[1], [0], [0], [1], [0, 0, 1, 1], [], []>} : vector<128x128xbf16>, vector<128x128xbf16>, vector<128x128xf32> -> vector<128x128xf32>
    %7 = arith.addf %3, %6 : vector<128x128xf32>
    %c0_6 = arith.constant 0 : index
    %c0_7 = arith.constant 0 : index
    %8 = vector.load %arg7[%c0_6, %c0_7] : memref<128x128xf32, #tpu.memory_space<vmem>>, vector<128x128xf32>
    tpu.vector_store %arg7[%c0_6, %c0_7], %7 {strides = array<i32>} : memref<128x128xf32, #tpu.memory_space<vmem>>, vector<128x128xf32>,
    %c0_i32_8 = arith.constant 0 : i32
    %9 = arith.cmpi eq, %arg1, %c0_i32_8 : i32
    %10 = arith.extui %9 : i1 to i32
    %c0_i32_9 = arith.constant 0 : i32
    %11 = arith.cmpi ne, %10, %c0_i32_9 : i32
    scf.if %11 {
      %c0_10 = arith.constant 0 : index
      %c0_11 = arith.constant 0 : index
      %12 = vector.load %arg7[%c0_10, %c0_11] : memref<128x128xf32, #tpu.memory_space<vmem>>, vector<128x128xf32>
      %13 = math.tanh %12 : vector<128x128xf32>
      %14 = arith.truncf %13 : vector<128x128xf32> to vector<128x128xbf16>
      %c0_12 = arith.constant 0 : index
      %c0_13 = arith.constant 0 : index
      %15 = vector.load %arg5[%c0_12, %c0_13] : memref<128x128xbf16, #tpu.memory_space<vmem>>, vector<128x128xbf16>
      tpu.vector_store %arg5[%c0_12, %c0_13], %14 {strides = array<i32>} : memref<128x128xbf16, #tpu.memory_space<vmem>>, vector<128x128xbf16>,
      %c0_14 = arith.constant 0 : index
      %c0_15 = arith.constant 0 : index
      %16 = vector.load %arg4[%c0_14, %c0_15] : memref<128x128xf32, #tpu.memory_space<vmem>>, vector<128x128xf32>
      %17 = arith.addf %16, %13 : vector<128x128xf32>
      %c0_16 = arith.constant 0 : index
      %c0_17 = arith.constant 0 : index
      %18 = vector.load %arg6[%c0_16, %c0_17] : memref<128x128xf32, #tpu.memory_space<vmem>>, vector<128x128xf32>
      tpu.vector_store %arg6[%c0_16, %c0_17], %17 {strides = array<i32>} : memref<128x128xf32, #tpu.memory_space<vmem>>, vector<128x128xf32>,
    } else {
    }
    return
  }
  func.func @transform_0(%arg0: i32, %arg1: i32) -> (i32, i32) {
    %c0_i32 = arith.constant 0 : i32
    return %arg0, %arg1 : i32, i32
  }
  func.func @transform_1(%arg0: i32, %arg1: i32) -> (i32, i32) {
    %c0_i32 = arith.constant 0 : i32
    %c0_i32_0 = arith.constant 0 : i32
    return %arg1, %c0_i32 : i32, i32
  }
  func.func @transform_2(%arg0: i32, %arg1: i32) -> (i32, i32) {
    %c0_i32 = arith.constant 0 : i32
    %c0_i32_0 = arith.constant 0 : i32
    return %arg0, %c0_i32 : i32, i32
  }
  func.func @transform_3(%arg0: i32, %arg1: i32) -> (i32, i32) {
    %c0_i32 = arith.constant 0 : i32
    %c0_i32_0 = arith.constant 0 : i32
    return %arg0, %c0_i32 : i32, i32
  }
  func.func @transform_4(%arg0: i32, %arg1: i32) -> (i32, i32) {
    %c0_i32 = arith.constant 0 : i32
    %c0_i32_0 = arith.constant 0 : i32
    return %arg0, %c0_i32 : i32, i32
  }
}

</mosaic_0001>

<bundles_post_ra>
// kernel: tpu_custom_call.1
= control target key start
LH: loop header
LB: loop body
LE: loop exit
PB: predicated region body
PF: predicated region fallthrough
CT: control target
= control target key end

     0   :  { %10 = vsyncpa [#allocation4], 0  ;;  %s847_s0 = inlined_call_operand.hbm [shape: bf16[128,128], index: 0, kind: input, shape index: {}]   ;;  %s848_s1 = inlined_call_operand.hbm [shape: bf16[128,128], index: 1, kind: input, shape index: {}]   ;;  %s849_s2 = inlined_call_operand.hbm [shape: f32[128,128], index: 2, kind: input, shape index: {}]   ;;  %s850_s3 = inlined_call_operand.hbm [shape: bf16[128,128], index: 3, kind: output, shape index: {0}]   ;;  %s851_s4 = inlined_call_operand.hbm [shape: f32[128,128], index: 4, kind: output, shape index: {1}]  }
   0x1   :  { %11 = vsyncpa [#allocation7], 0 }
   0x2   :  { %12 = vsyncpa [#allocation5], 0 }
   0x3   :  { %13 = vsyncpa [#allocation11], 0  ;;  %s31_s17 = sshll.u32 %s848_s1, 4  ;;  %s783_s18 = smov [#allocation6]   ;;  %s32_s17 = int_to_ptr.hbm [resolvable:$true] %s31_s17 }
   0x4   :  { %s33_s19 = sshll.u32 %s783_s18, 4  ;;  %s18_s22 = sshll.u32 %s847_s0, 4  ;;  %s34_s19 = int_to_ptr.vmem [resolvable:$true] %s33_s19  ;;  %s19_s22 = int_to_ptr.hbm [resolvable:$true] %s18_s22 }
   0x5   :  { %s784_s23 = smov 64   ;;  %s785_s24 = smov 4  }
   0x6   :  { %39 = dma.hbm_to_vmem [thread:$0]  %s32_s17, 1024, %s34_s19, [#allocation7], %s784_s23, %s784_s23, %s785_s24  }
   0x7   :  { %s786_s25 = smov [#allocation3]   ;;  %s44_s1 = sshll.u32 %s849_s2, 4  ;;  %s45_s1 = int_to_ptr.hbm [resolvable:$true] %s44_s1 }
   0x8   :  { %s20_s26 = sshll.u32 %s786_s25, 4  ;;  %s787_s0 = smov [#allocation8]   ;;  %s21_s26 = int_to_ptr.vmem [resolvable:$true] %s20_s26 }
   0x9   :  { %26 = dma.hbm_to_vmem [thread:$0]  %s19_s22, 1024, %s21_s26, [#allocation4], %s784_s23, %s784_s23, %s785_s24  }
   0xa   :  { %s46_s29 = sshll.u32 %s787_s0, 4  ;;  %s788_s30 = smov 128   ;;  %s47_s29 = int_to_ptr.vmem [resolvable:$true] %s46_s29 }
   0xb   :  { %s789_s5 = smov 8  }
   0xc   :  { %52 = dma.hbm_to_vmem [thread:$0]  %s45_s1, 2048, %s47_s29, [#allocation7], %s788_s30, %s788_s30, %s789_s5  }
   0xd   :  { %775 = dma.done.wait [#allocation4], 1024  }
   0xe   :  { %776 = vsyncadd [#allocation4], 4294966272 }
   0xf   :  { %777 = dma.done.wait [#allocation7], 3072  }
  0x10   :  { %778 = vsyncadd [#allocation7], 4294964224  ;;  %v542_v0 = vld [vmem:[#allocation6 + $0x38] sm:$0xff]  ;;  %v541_v1 = vld [vmem:[#allocation6 + $0x30] sm:$0xff]  ;;  %s790_s2 = smov [#allocation9]   ;;  %s431_s9 = sshll.u32 %s850_s3, 4  ;;  %s432_s9 = int_to_ptr.hbm [resolvable:$true] %s431_s9 }
  0x11   :  { %229 = vmatpush.bf16.msra.mxu0 %v542_v0  ;;  %590 = vmatpush.bf16.msra.mxu1 %v542_v0  ;;  %v540_v2 = vld [vmem:[#allocation6 + $0x28] sm:$0xff]  ;;  %v539_v3 = vld [vmem:[#allocation6 + $0x20] sm:$0xff]  ;;  %v538_v4 = vld [vmem:[#allocation6 + $0x18] sm:$0xff]  ;;  %s429_s6 = sshll.u32 %s790_s2, 4  ;;  %s791_s10 = smov [#allocation10]   ;;  %s430_s6 = int_to_ptr.vmem [resolvable:$true] %s429_s6 }
  0x12   :  { %591 = vmatpush.bf16.msra.mxu2 %v542_v0  ;;  %592 = vmatpush.bf16.msra.mxu3 %v542_v0  ;;  %v537_v5 = vld [vmem:[#allocation6 + $0x10] sm:$0xff]  ;;  %v536_v6 = vld [vmem:[#allocation6 + $0x8] sm:$0xff]  ;;  %v535_v7 = vld [vmem:[#allocation6] sm:$0xff]  ;;  %s442_s11 = sshll.u32 %s791_s10, 4  ;;  %s444_s14 = sshll.u32 %s851_s4, 4  ;;  %s443_s11 = int_to_ptr.vmem [resolvable:$true] %s442_s11  ;;  %s445_s14 = int_to_ptr.hbm [resolvable:$true] %s444_s14 }
  0x13   :  { %v527_v8 = vld [vmem:[#allocation3] sm:$0xff]  ;;  %v529_v9 = vld [vmem:[#allocation3 + $0x10] sm:$0xff]  ;;  %v528_v12 = vld [vmem:[#allocation3 + $0x8] sm:$0xff] }
  0x14   :  { %v531_v10 = vld [vmem:[#allocation3 + $0x20] sm:$0xff]  ;;  %v533_v11 = vld [vmem:[#allocation3 + $0x30] sm:$0xff]  ;;  %v530_v13 = vld [vmem:[#allocation3 + $0x18] sm:$0xff] }
  0x15   :  { %230 = vmatpush.bf16.msra.mxu0 %v541_v1  ;;  %593 = vmatpush.bf16.msra.mxu1 %v541_v1  ;;  %v532_v14 = vld [vmem:[#allocation3 + $0x28] sm:$0xff]  ;;  %v534_v15 = vld [vmem:[#allocation3 + $0x38] sm:$0xff]  ;;  %v377_v18 = vld [vmem:[#allocation8] sm:$0xff] }
  0x16   :  { %594 = vmatpush.bf16.msra.mxu2 %v541_v1  ;;  %595 = vmatpush.bf16.msra.mxu3 %v541_v1  ;;  %v381_v19 = vld [vmem:[#allocation8 + $0x20] sm:$0xff]  ;;  %v378_v31 = vld [vmem:[#allocation8 + $0x8] sm:$0xff]  ;;  %v379_v49 = vld [vmem:[#allocation8 + $0x10] sm:$0xff] }
  0x17   :  { %v385_v28 = vld [vmem:[#allocation8 + $0x40] sm:$0xff]  ;;  %v382_v34 = vld [vmem:[#allocation8 + $0x28] sm:$0xff]  ;;  %v383_v53 = vld [vmem:[#allocation8 + $0x30] sm:$0xff] }
  0x18   :  { %v389_v29 = vld [vmem:[#allocation8 + $0x60] sm:$0xff]  ;;  %v386_v46 = vld [vmem:[#allocation8 + $0x48] sm:$0xff]  ;;  %v387_v0 = vld [vmem:[#allocation8 + $0x50] sm:$0xff] }
  0x19   :  { %231 = vmatpush.bf16.msra.mxu0 %v540_v2  ;;  %596 = vmatpush.bf16.msra.mxu1 %v540_v2  ;;  %v390_v47 = vld [vmem:[#allocation8 + $0x68] sm:$0xff]  ;;  %v391_v1 = vld [vmem:[#allocation8 + $0x70] sm:$0xff] }
  0x1a   :  { %597 = vmatpush.bf16.msra.mxu2 %v540_v2  ;;  %598 = vmatpush.bf16.msra.mxu3 %v540_v2 }
  0x1d   :  { %232 = vmatpush.bf16.msra.mxu0 %v539_v3  ;;  %599 = vmatpush.bf16.msra.mxu1 %v539_v3 }
  0x1e   :  { %600 = vmatpush.bf16.msra.mxu2 %v539_v3  ;;  %601 = vmatpush.bf16.msra.mxu3 %v539_v3  ;;  %v380_v3 = vld [vmem:[#allocation8 + $0x18] sm:$0xff] }
  0x21   :  { %233 = vmatpush.bf16.msra.mxu0 %v538_v4  ;;  %602 = vmatpush.bf16.msra.mxu1 %v538_v4 }
  0x22   :  { %603 = vmatpush.bf16.msra.mxu2 %v538_v4  ;;  %604 = vmatpush.bf16.msra.mxu3 %v538_v4 }
  0x25   :  { %234 = vmatpush.bf16.msra.mxu0 %v537_v5  ;;  %605 = vmatpush.bf16.msra.mxu1 %v537_v5 }
  0x26   :  { %606 = vmatpush.bf16.msra.mxu2 %v537_v5  ;;  %607 = vmatpush.bf16.msra.mxu3 %v537_v5 }
  0x29   :  { %235 = vmatpush.bf16.msra.mxu0 %v536_v6  ;;  %608 = vmatpush.bf16.msra.mxu1 %v536_v6 }
  0x2a   :  { %609 = vmatpush.bf16.msra.mxu2 %v536_v6  ;;  %610 = vmatpush.bf16.msra.mxu3 %v536_v6  ;;  %v384_v6 = vld [vmem:[#allocation8 + $0x38] sm:$0xff] }
  0x2d   :  { %236 = vmatpush.bf16.msra.mxu0 %v535_v7  ;;  %611 = vmatpush.bf16.msra.mxu1 %v535_v7 }
  0x2e   :  { %612 = vmatpush.bf16.msra.mxu2 %v535_v7  ;;  %613 = vmatpush.bf16.msra.mxu3 %v535_v7 }
  0x30   :  { %237 = vmatmul.bf16.vlgmr.msra.gmra.mxu0 %v527_v8  ;;  %247 = vmatmul.bf16.vlgmr.msra.gmra.mxu1 %v529_v9 }
  0x31   :  { %257 = vmatmul.bf16.vlgmr.msra.gmra.mxu2 %v531_v10  ;;  %267 = vmatmul.bf16.vlgmr.msra.gmra.mxu3 %v533_v11 }
  0x40   :  { %242 = vmatmul.bf16.gmra.mxu0 %v528_v12  ;;  %252 = vmatmul.bf16.gmra.mxu1 %v530_v13 }
  0x41   :  { %262 = vmatmul.bf16.gmra.mxu2 %v532_v14  ;;  %272 = vmatmul.bf16.gmra.mxu3 %v534_v15 }
  0xad   :  { %v238_v16 = vpop.f32.mrf.mxu0  ;;  %v248_v17 = vpop.f32.mrf.mxu1 }
  0xae   :  { %623 = vtanh.f32 %v238_v16  ;;  %v388_v16 = vld [vmem:[#allocation8 + $0x58] sm:$0xff] }
  0xaf   :  { %625 = vtanh.f32 %v248_v17  ;;  %v392_v17 = vld [vmem:[#allocation8 + $0x78] sm:$0xff] }
  0xb4   :  { %v624_v20 = vpop.eup %623  ;;  %v258_v21 = vpop.f32.mrf.mxu2 }
  0xb5   :  { %v268_v22 = vpop.f32.mrf.mxu3  ;;  %v626_v23 = vpop.eup %625  ;;  %v393_v24 = vadd.f32 %v624_v20, %v377_v18  ;;  %627 = vtanh.f32 %v258_v21 }
  0xb6   :  { %v240_v25 = vpop.f32.mrf.mxu0  ;;  %v250_v26 = vpop.f32.mrf.mxu1  ;;  %v397_v27 = vadd.f32 %v626_v23, %v381_v19  ;;  %629 = vtanh.f32 %v268_v22 }
  0xb7   :  { %409 = vst [vmem:[#allocation10] sm:$0xff] %v393_v24  ;;  %631 = vtanh.f32 %v240_v25 }
  0xb8   :  { %413 = vst [vmem:[#allocation10 + $0x20] sm:$0xff] %v397_v27  ;;  %633 = vtanh.f32 %v250_v26 }
  0xbb   :  { %v628_v30 = vpop.eup %627 }
  0xbc   :  { %v630_v32 = vpop.eup %629  ;;  %v401_v33 = vadd.f32 %v628_v30, %v385_v28  ;;  %v260_v35 = vpop.f32.mrf.mxu2 }
  0xbd   :  { %v270_v36 = vpop.f32.mrf.mxu3  ;;  %v632_v37 = vpop.eup %631  ;;  %v405_v38 = vadd.f32 %v630_v32, %v389_v29  ;;  %635 = vtanh.f32 %v260_v35 }
  0xbe   :  { %v243_v39 = vpop.f32.mrf.mxu0  ;;  %v253_v40 = vpop.f32.mrf.mxu1  ;;  %417 = vst [vmem:[#allocation10 + $0x40] sm:$0xff] %v401_v33  ;;  %v546_v42 = vpack.c.bf16 %v632_v37, %v624_v20  ;;  %v394_v43 = vadd.f32 %v632_v37, %v378_v31  ;;  %637 = vtanh.f32 %v270_v36 }
  0xbf   :  { %v634_v41 = vpop.eup %633  ;;  %421 = vst [vmem:[#allocation10 + $0x60] sm:$0xff] %v405_v38  ;;  %639 = vtanh.f32 %v243_v39 }
  0xc0   :  { %v556_v44 = vpack.c.bf16 %v634_v41, %v626_v23  ;;  %v398_v45 = vadd.f32 %v634_v41, %v382_v34  ;;  %547 = vst [vmem:[#allocation9] sm:$0xff] %v546_v42   ;;  %641 = vtanh.f32 %v253_v40 }
  0xc1   :  { %410 = vst [vmem:[#allocation10 + $0x8] sm:$0xff] %v394_v43 }
  0xc2   :  { %584 = vst [vmem:[#allocation9 + $0x10] sm:$0xff] %v556_v44  }
  0xc3   :  { %v636_v48 = vpop.eup %635  ;;  %414 = vst [vmem:[#allocation10 + $0x28] sm:$0xff] %v398_v45 }
  0xc4   :  { %v638_v50 = vpop.eup %637  ;;  %v566_v51 = vpack.c.bf16 %v636_v48, %v628_v30  ;;  %v402_v52 = vadd.f32 %v636_v48, %v386_v46  ;;  %v263_v54 = vpop.f32.mrf.mxu2 }
  0xc5   :  { %v273_v55 = vpop.f32.mrf.mxu3  ;;  %v640_v56 = vpop.eup %639  ;;  %v576_v57 = vpack.c.bf16 %v638_v50, %v630_v32  ;;  %v406_v58 = vadd.f32 %v638_v50, %v390_v47  ;;  %643 = vtanh.f32 %v263_v54 }
  0xc6   :  { %v245_v59 = vpop.f32.mrf.mxu0  ;;  %v255_v60 = vpop.f32.mrf.mxu1  ;;  %586 = vst [vmem:[#allocation9 + $0x20] sm:$0xff] %v566_v51   ;;  %v395_v62 = vadd.f32 %v640_v56, %v379_v49  ;;  %645 = vtanh.f32 %v273_v55 }
  0xc7   :  { %v642_v61 = vpop.eup %641  ;;  %418 = vst [vmem:[#allocation10 + $0x48] sm:$0xff] %v402_v52  ;;  %647 = vtanh.f32 %v245_v59 }
  0xc8   :  { %v399_v63 = vadd.f32 %v642_v61, %v383_v53  ;;  %588 = vst [vmem:[#allocation9 + $0x30] sm:$0xff] %v576_v57   ;;  %649 = vtanh.f32 %v255_v60 }
  0xc9   :  { %422 = vst [vmem:[#allocation10 + $0x68] sm:$0xff] %v406_v58 }
  0xca   :  { %411 = vst [vmem:[#allocation10 + $0x10] sm:$0xff] %v395_v62 }
  0xcb   :  { %v644_v2 = vpop.eup %643  ;;  %415 = vst [vmem:[#allocation10 + $0x30] sm:$0xff] %v399_v63 }
  0xcc   :  { %v646_v4 = vpop.eup %645  ;;  %v403_v5 = vadd.f32 %v644_v2, %v387_v0  ;;  %v265_v7 = vpop.f32.mrf.mxu2 }
  0xcd   :  { %v275_v8 = vpop.f32.mrf.mxu3  ;;  %v648_v9 = vpop.eup %647  ;;  %v407_v10 = vadd.f32 %v646_v4, %v391_v1  ;;  %651 = vtanh.f32 %v265_v7 }
  0xce   :  { %v650_v11 = vpop.eup %649  ;;  %419 = vst [vmem:[#allocation10 + $0x50] sm:$0xff] %v403_v5  ;;  %v551_v12 = vpack.c.bf16 %v648_v9, %v640_v56  ;;  %v396_v13 = vadd.f32 %v648_v9, %v380_v3  ;;  %653 = vtanh.f32 %v275_v8 }
  0xcf   :  { %423 = vst [vmem:[#allocation10 + $0x70] sm:$0xff] %v407_v10  ;;  %v561_v14 = vpack.c.bf16 %v650_v11, %v642_v61  ;;  %v400_v15 = vadd.f32 %v650_v11, %v384_v6 }
  0xd0   :  { %583 = vst [vmem:[#allocation9 + $0x8] sm:$0xff] %v551_v12  }
  0xd1   :  { %412 = vst [vmem:[#allocation10 + $0x18] sm:$0xff] %v396_v13 }
  0xd2   :  { %585 = vst [vmem:[#allocation9 + $0x18] sm:$0xff] %v561_v14  }
  0xd3   :  { %v652_v18 = vpop.eup %651  ;;  %416 = vst [vmem:[#allocation10 + $0x38] sm:$0xff] %v400_v15 }
  0xd4   :  { %v654_v19 = vpop.eup %653  ;;  %v571_v20 = vpack.c.bf16 %v652_v18, %v644_v2  ;;  %v404_v21 = vadd.f32 %v652_v18, %v388_v16 }
  0xd5   :  { %v581_v22 = vpack.c.bf16 %v654_v19, %v646_v4  ;;  %v408_v23 = vadd.f32 %v654_v19, %v392_v17 }
  0xd6   :  { %587 = vst [vmem:[#allocation9 + $0x28] sm:$0xff] %v571_v20  }
  0xd7   :  { %420 = vst [vmem:[#allocation10 + $0x58] sm:$0xff] %v404_v21 }
  0xd8   :  { %589 = vst [vmem:[#allocation9 + $0x38] sm:$0xff] %v581_v22  }
  0xd9   :  { %424 = vst [vmem:[#allocation10 + $0x78] sm:$0xff] %v408_v23  ;;  %437 = dma.vmem_to_hbm [thread:$0]  %s430_s6, 1024, %s432_s9, [#allocation5], %s784_s23, %s784_s23, %s785_s24  }
  0xda   :  { %450 = dma.vmem_to_hbm [thread:$0]  %s443_s11, 2048, %s445_s14, [#allocation11], %s788_s30, %s788_s30, %s789_s5  }
  0xdb   :  { %779 = dma.done.wait [#allocation5], 1024  }
  0xdc   :  { %780 = vsyncadd [#allocation5], 4294966272 }
  0xdd   :  { %781 = dma.done.wait [#allocation11], 2048  }
  0xde   :  { %782 = vsyncadd [#allocation11], 4294965248 }
  0xdf   :  { %459 = vsyncpa [#allocation4], 1 }
  0xe0   :  { %460 = vsyncpa [#allocation7], 1 }
  0xe1   :  { %461 = vsyncpa [#allocation5], 1 }
  0xe2   :  { %462 = vsyncpa [#allocation11], 1 }

</bundles_post_ra>
